<compile_context>
chip_gen: v7x
topology: tpu7x:2x2x1
jax: 0.10.0
libtpu: 0.0.40
codegen_flags: <defaults>
</compile_context>

<pallas_src>
import functools

import jax
import jax.numpy as jnp
from jax.experimental import pallas as pl
from jax.experimental.pallas import tpu as pltpu

EPS = 1e-5

# Tiny channel counts go to the VPU broadcast-MAC path: a (Cout, K*Cin) matmul
# with Cout << 128/256 is almost entirely MXU padding (worst on v6e/v7x's
# 256x256 arrays).  Wider channels use K accumulating MXU matmuls.
_VPU_MAC_MAX_COUT = 8
_VPU_MAC_MAX_TAP_ROWS = 32


def _shifted_tap(x, d, l):
    """tap[:, j] = x[:, j + d] if 0 <= j + d < l else 0   ('same' zero padding).

    Lane-aligned L: pltpu.roll (XLU slot, overlaps MXU) + iota boundary mask.
    Small / unaligned L: tiny zero-block concat (guaranteed lowering, negligible
    cost at those sizes).
    """
    if d == 0:
        return x
    ax = x.ndim - 1
    if l % 128 == 0:
        shift = (-d) % l                                   # non-negative shift
        shifted = pltpu.roll(x, shift, axis=ax)            # shifted[j] = x[(j+d) % l]
        lane = jax.lax.broadcasted_iota(jnp.int32, x.shape, ax)
        mask = (lane < l - d) if d > 0 else (lane >= -d)
        return jnp.where(mask, shifted, jnp.zeros_like(shifted))
    z = jnp.zeros(x.shape[:-1] + (abs(d),), x.dtype)
    if d > 0:
        return jnp.concatenate([x[..., d:], z], axis=ax)
    return jnp.concatenate([z, x[..., :l + d]], axis=ax)


def _conv_same(w_ref, x, l):
    """'same' 1-D convolution: y[o, j] = sum_{t, c} w[t, o, c] * x[c, j + t - pad].

    w_ref : (K, Cout, Cin) ref, tap-major.   x : (Cin, L) in compute dtype.
    Returns (Cout, L) float32.
    """
    k, cout, cin = w_ref.shape
    pad = k // 2
    use_vpu = cout <= _VPU_MAC_MAX_COUT and k * cin <= _VPU_MAC_MAX_TAP_ROWS
    acc = jnp.zeros((cout, l), jnp.float32)
    # Static unroll over the K taps (small, fixed): K accumulating matmuls /
    # broadcast-MACs; the tap shift rides on the XLU and overlaps the MXU.
    for t in range(k):
        tap = _shifted_tap(x, t - pad, l)                  # (Cin, L), zeroed halo
        w_t = w_ref[t]                                     # aligned (Cout, Cin) load
        if use_vpu:
            w_f = w_t.astype(jnp.float32)
            tap_f = tap.astype(jnp.float32)
            for ci in range(cin):
                acc = acc + w_f[:, ci:ci + 1] * tap_f[ci:ci + 1, :]
        else:
            acc = acc + jnp.dot(w_t, tap, preferred_element_type=jnp.float32)
    return acc


def _centered_stats(y, l, mean_ref, m2_ref):
    """Per-block centered BN partials (mean, M2) while y is still live in vregs."""
    mu = jnp.sum(y, axis=1, keepdims=True) * (1.0 / l)     # (Cout, 1)
    d = y - mu
    mean_ref[0] = mu
    m2_ref[0] = jnp.sum(d * d, axis=1, keepdims=True)


def _conv1_stats_kernel(x_ref, w_ref, y_ref, mean_ref, m2_ref):
    """conv1 for one batch element + fused per-channel BN1 partial statistics."""
    l = x_ref.shape[2]
    y = _conv_same(w_ref, x_ref[0], l)                     # (Cout, L) f32
    y_ref[0] = y.astype(y_ref.dtype)                       # bf16/f32 HBM stream
    _centered_stats(y, l, mean_ref, m2_ref)


def _bn1_relu_conv2_stats_kernel(y1_ref, scale_ref, shift_ref, w_ref,
                                 y2_ref, mean_ref, m2_ref):
    """bn1 (precombined scale/shift, f32) + ReLU + conv2 + fused BN2 partials."""
    l = y1_ref.shape[2]
    h = jnp.maximum(y1_ref[0] * scale_ref[...] + shift_ref[...], 0.0)   # f32
    y = _conv_same(w_ref, h.astype(w_ref.dtype), l)
    y2_ref[0] = y.astype(y2_ref.dtype)
    _centered_stats(y, l, mean_ref, m2_ref)


def _bn2_residual_relu_kernel(y2_ref, x_ref, scale_ref, shift_ref, o_ref):
    """bn2 + residual add (downsample=None) + ReLU."""
    y = (y2_ref[0] * scale_ref[...] + shift_ref[...]
         + x_ref[0].astype(jnp.float32))
    o_ref[0] = jnp.maximum(y, 0.0)


def _bn_scale_shift(mean_b, m2_b, gamma, beta, l):
    """Exact parallel-variance combine of per-block (mean, M2) BN partials."""
    mu = mean_b[:, :, 0]                                   # (N, C)
    m2p = m2_b[:, :, 0]                                    # (N, C)
    n = mu.shape[0]
    mean = jnp.mean(mu, axis=0)                            # (C,)
    m2 = jnp.sum(m2p, axis=0) + l * jnp.sum(jnp.square(mu - mean), axis=0)
    var = m2 / (n * l)                                     # biased batch variance
    scale = gamma.astype(jnp.float32) * jax.lax.rsqrt(var + EPS)
    shift = beta.astype(jnp.float32) - mean * scale
    return scale.reshape(-1, 1), shift.reshape(-1, 1)


def _vmem_ceiling_bytes():
    """3/4 of physical VMEM (~48 MiB on v7x, ~96 MiB on v5e/v6e), safe fallback."""
    try:
        cap = int(getattr(pltpu.get_tpu_info(), "vmem_capacity_bytes", 64 << 20))
    except Exception:
        cap = 64 << 20
    return max(32 << 20, (3 * cap) // 4)


def _compiler_params(*per_step_nbytes):
    """dimension_semantics + a VMEM limit sized from the real per-step footprint."""
    need = 2 * sum(int(b) for b in per_step_nbytes) + (2 << 20)   # double buffering
    limit = int(min(max(need, 16 << 20), _vmem_ceiling_bytes()))
    return pltpu.CompilerParams(dimension_semantics=("parallel",),
                                vmem_limit_bytes=limit)


@functools.partial(jax.jit, static_argnames=("kernel_size", "compute_dtype"))
def basic_block_1d(x, w1, w2, gamma1, beta1, gamma2, beta2, *,
                   kernel_size, compute_dtype=jnp.float32):
    """x: (N, C, L) in PyTorch Conv1d layout; w1/w2: (Cout, Cin, K)."""
    n, cin, l = x.shape
    k = kernel_size
    cout = w1.shape[0]
    if k % 2 != 1:
        raise ValueError("kernel_size must be odd: Conv1d(padding=k//2) only "
                         "preserves length (required by the residual add) for odd k")
    if cin != cout:
        raise ValueError("downsample=None requires in_planes == out_planes")

    cdt = jnp.dtype(compute_dtype)
    f32 = jnp.float32
    # Activations / weights / inter-pass streams in compute dtype (bf16 recommended
    # on v6e/v7x); conv accumulation and all BatchNorm math stay float32.
    xc = x.astype(cdt)                                            # (N, C, L)
    w1k = jnp.transpose(w1, (2, 0, 1)).astype(cdt)                # (K, Cout, Cin)
    w2k = jnp.transpose(w2, (2, 0, 1)).astype(cdt)                # (K, Cout, Cout)

    esz = cdt.itemsize
    blk_x = cin * l * esz
    blk_y = cout * l * esz                 # y1/y2 stored in compute dtype
    blk_w1 = k * cout * cin * esz
    blk_w2 = k * cout * cout * esz
    blk_stats = 2 * cout * 4
    blk_bn = 2 * cout * 4
    blk_work = 4 * cout * l * 4 + 2 * cin * l * esz   # f32 acc + tap temporaries

    act_shape = jax.ShapeDtypeStruct((n, cout, l), cdt)
    stat_shape = jax.ShapeDtypeStruct((n, cout, 1), f32)
    act_spec = pl.BlockSpec((1, cout, l), lambda i: (i, 0, 0))
    x_spec = pl.BlockSpec((1, cin, l), lambda i: (i, 0, 0))
    stat_spec = pl.BlockSpec((1, cout, 1), lambda i: (i, 0, 0))
    bn_spec = pl.BlockSpec((cout, 1), lambda i: (0, 0))
    w1_spec = pl.BlockSpec((k, cout, cin), lambda i: (0, 0, 0))
    w2_spec = pl.BlockSpec((k, cout, cout), lambda i: (0, 0, 0))

    # TODO(synk): for large C*L, add an L-tile grid axis (halo DMA) and pack
    # several batch elements per step so per-step VMEM stays bounded within v7x's
    # 64 MiB and each TensorCore gets >=3-4 pipeline steps even at small N.

    # ---------------- pass 1: conv1 + BN1 partial statistics ----------------
    y1, mean1, m2_1 = pl.pallas_call(
        _conv1_stats_kernel,
        grid=(n,),
        in_specs=[x_spec, w1_spec],
        out_specs=(act_spec, stat_spec, stat_spec),
        out_shape=(act_shape, stat_shape, stat_shape),
        compiler_params=_compiler_params(blk_x, blk_w1, blk_y, blk_stats, blk_work),
        cost_estimate=pl.CostEstimate(
            flops=2 * n * cout * k * cin * l,
            transcendentals=0,
            bytes_accessed=n * (blk_x + blk_y + blk_stats) + blk_w1),
    )(xc, w1k)

    scale1, shift1 = _bn_scale_shift(mean1, m2_1, gamma1, beta1, l)

    # ------------- pass 2: bn1 + relu + conv2 + BN2 partial stats -----------
    y2, mean2, m2_2 = pl.pallas_call(
        _bn1_relu_conv2_stats_kernel,
        grid=(n,),
        in_specs=[act_spec, bn_spec, bn_spec, w2_spec],
        out_specs=(act_spec, stat_spec, stat_spec),
        out_shape=(act_shape, stat_shape, stat_shape),
        compiler_params=_compiler_params(blk_y, blk_bn, blk_w2, blk_y, blk_stats,
                                         blk_work),
        cost_estimate=pl.CostEstimate(
            flops=2 * n * cout * k * cout * l + 4 * n * cout * l,
            transcendentals=0,
            bytes_accessed=n * (2 * blk_y + blk_stats) + blk_w2 + blk_bn),
    )(y1, scale1, shift1, w2k)

    scale2, shift2 = _bn_scale_shift(mean2, m2_2, gamma2, beta2, l)

    # ---------------- pass 3: bn2 + residual add + relu ---------------------
    out = pl.pallas_call(
        _bn2_residual_relu_kernel,
        grid=(n,),
        in_specs=[act_spec, x_spec, bn_spec, bn_spec],
        out_specs=act_spec,
        out_shape=jax.ShapeDtypeStruct((n, cout, l), f32),
        compiler_params=_compiler_params(blk_y, blk_x, blk_bn, cout * l * 4),
        cost_estimate=pl.CostEstimate(
            flops=4 * n * cout * l,
            transcendentals=0,
            bytes_accessed=n * (blk_y + blk_x + cout * l * 4) + blk_bn),
    )(y2, xc, scale2, shift2)

    # TODO(synk): BatchNorm running_mean / running_var buffer updates of
    # training mode are not emitted; only the forward activation is computed.
    return out


# --------------------------- pure-JAX reference -----------------------------
_HI = jax.lax.Precision.HIGHEST


def _reference(x, w1, w2, gamma1, beta1, gamma2, beta2, kernel_size):
    k = kernel_size
    pad = k // 2

    def conv1d(a, w):                        # a: (N, C, L), w: (Cout, Cin, K)
        ap = jnp.pad(a, ((0, 0), (0, 0), (pad, pad)))
        ll = a.shape[-1]
        return sum(jnp.einsum("ncl,oc->nol", ap[:, :, t:t + ll], w[:, :, t],
                              precision=_HI) for t in range(k))

    def bn_train(a, g, b):                   # biased batch stats over (N, L)
        m = jnp.mean(a, axis=(0, 2), keepdims=True)
        v = jnp.mean(jnp.square(a - m), axis=(0, 2), keepdims=True)
        return (a - m) * jax.lax.rsqrt(v + EPS) * g.reshape(1, -1, 1) \
            + b.reshape(1, -1, 1)

    h = jax.nn.relu(bn_train(conv1d(x, w1), gamma1, beta1))
    h = bn_train(conv1d(h, w2), gamma2, beta2)
    return jax.nn.relu(h + x)


def _run_case(key, n, c, l, k, compute_dtype, atol, rtol):
    keys = jax.random.split(key, 7)
    x = jax.random.normal(keys[0], (n, c, l), dtype=jnp.float32)
    w1 = 0.2 * jax.random.normal(keys[1], (c, c, k), dtype=jnp.float32)
    w2 = 0.2 * jax.random.normal(keys[2], (c, c, k), dtype=jnp.float32)
    g1 = 1.0 + 0.1 * jax.random.normal(keys[3], (c,), dtype=jnp.float32)
    b1 = 0.1 * jax.random.normal(keys[4], (c,), dtype=jnp.float32)
    g2 = 1.0 + 0.1 * jax.random.normal(keys[5], (c,), dtype=jnp.float32)
    b2 = 0.1 * jax.random.normal(keys[6], (c,), dtype=jnp.float32)

    out = basic_block_1d(x, w1, w2, g1, b1, g2, b2,
                         kernel_size=k, compute_dtype=compute_dtype)
    out = jax.block_until_ready(out)

    ref = _reference(x, w1, w2, g1, b1, g2, b2, k)
    assert out.shape == (n, c, l), out.shape
    assert bool(jnp.all(jnp.isfinite(out)))
    err = float(jnp.max(jnp.abs(out - ref)))
    assert bool(jnp.allclose(out, ref, atol=atol, rtol=rtol)), f"max abs err {err}"


if __name__ == "__main__":
    key = jax.random.PRNGKey(0)
    k_small, k_small5, k_wide = jax.random.split(key, 3)

    # Small shapes matching the module defaults (batch=2, channels=4, length=16,
    # kernel_size=3, stride=1, downsample=None) -> VPU broadcast-MAC path,
    # zero-block tap construction (L not lane-aligned).
    _run_case(k_small, n=2, c=4, l=16, k=3,
              compute_dtype=jnp.float32, atol=2e-3, rtol=2e-3)

    # Same tiny channels with kernel_size=5 (pad=2) for halo coverage.
    _run_case(k_small5, n=2, c=4, l=16, k=5,
              compute_dtype=jnp.float32, atol=2e-3, rtol=2e-3)

    # Wider, lane-aligned shapes -> K accumulating MXU matmuls with
    # pltpu.roll-based taps, float32 storage.
    _run_case(k_wide, n=2, c=16, l=128, k=3,
              compute_dtype=jnp.float32, atol=2e-3, rtol=2e-3)

    # bfloat16 activations / weights / inter-pass streams (v6e/v7x
    # recommendation); BN math and conv accumulation stay float32.
    _run_case(k_wide, n=2, c=16, l=128, k=3,
              compute_dtype=jnp.bfloat16, atol=8e-2, rtol=8e-2)

    print("KERNEL_OK")
</pallas_src>

<mosaic_0001>
module attributes {stable_mosaic.version = 11 : i64} {
  func.func @_conv1_stats_kernel(%arg0: i32, %arg1: memref<1x4x16xf32, #tpu.memory_space<vmem>>, %arg2: memref<3x4x4xf32, #tpu.memory_space<vmem>>, %arg3: memref<1x4x16xf32, #tpu.memory_space<vmem>>, %arg4: memref<1x4x1xf32, #tpu.memory_space<vmem>>, %arg5: memref<1x4x1xf32, #tpu.memory_space<vmem>>) attributes {dimension_semantics = [#tpu.dimension_semantics<parallel>], iteration_bounds = array<i64: 2>, scalar_prefetch = 0 : i64, scratch_operands = 0 : i64, tpu.core_type = #tpu.core_type<tc>, window_params = [{transform_indices = @transform_0, window_bounds = array<i64: 1, 4, 16>}, {pipeline_mode = #tpu.pipeline_mode<synchronous>, transform_indices = @transform_1, window_bounds = array<i64: 3, 4, 4>}, {transform_indices = @transform_2, window_bounds = array<i64: 1, 4, 16>}, {transform_indices = @transform_3, window_bounds = array<i64: 1, 4, 1>}, {transform_indices = @transform_4, window_bounds = array<i64: 1, 4, 1>}]} {
    %c0 = arith.constant 0 : index
    %c0_0 = arith.constant 0 : index
    %c0_1 = arith.constant 0 : index
    %0 = vector.load %arg1[%c0, %c0_0, %c0_1] : memref<1x4x16xf32, #tpu.memory_space<vmem>>, vector<1x4x16xf32>
    %1 = vector.shape_cast %0 : vector<1x4x16xf32> to vector<4x16xf32>
    %cst = arith.constant 0.000000e+00 : f32
    %2 = vector.broadcast %cst : f32 to vector<4x16xf32>
    %cst_2 = arith.constant 0.000000e+00 : f32
    %3 = vector.broadcast %cst_2 : f32 to vector<4x1xf32>
    %4 = vector.extract_strided_slice %1 {offsets = [0, 0], sizes = [4, 15], strides = [1, 1]} : vector<4x16xf32> to vector<4x15xf32>
    %5 = tpu.concatenate %3, %4 in 1 : vector<4x1xf32>, vector<4x15xf32> -> vector<4x16xf32>
    %c0_3 = arith.constant 0 : index
    %c0_4 = arith.constant 0 : index
    %c0_5 = arith.constant 0 : index
    %6 = vector.load %arg2[%c0_3, %c0_4, %c0_5] : memref<3x4x4xf32, #tpu.memory_space<vmem>>, vector<1x4x4xf32>
    %7 = vector.shape_cast %6 : vector<1x4x4xf32> to vector<4x4xf32>
    %8 = vector.extract_strided_slice %7 {offsets = [0, 0], sizes = [4, 1], strides = [1, 1]} : vector<4x4xf32> to vector<4x1xf32>
    %9 = vector.extract_strided_slice %5 {offsets = [0, 0], sizes = [1, 16], strides = [1, 1]} : vector<4x16xf32> to vector<1x16xf32>
    %10 = vector.broadcast %8 : vector<4x1xf32> to vector<4x16xf32>
    %11 = vector.broadcast %9 : vector<1x16xf32> to vector<4x16xf32>
    %12 = arith.mulf %10, %11 : vector<4x16xf32>
    %13 = arith.addf %2, %12 : vector<4x16xf32>
    %14 = vector.extract_strided_slice %7 {offsets = [0, 1], sizes = [4, 1], strides = [1, 1]} : vector<4x4xf32> to vector<4x1xf32>
    %15 = vector.extract_strided_slice %5 {offsets = [1, 0], sizes = [1, 16], strides = [1, 1]} : vector<4x16xf32> to vector<1x16xf32>
    %16 = vector.broadcast %14 : vector<4x1xf32> to vector<4x16xf32>
    %17 = vector.broadcast %15 : vector<1x16xf32> to vector<4x16xf32>
    %18 = arith.mulf %16, %17 : vector<4x16xf32>
    %19 = arith.addf %13, %18 : vector<4x16xf32>
    %20 = vector.extract_strided_slice %7 {offsets = [0, 2], sizes = [4, 1], strides = [1, 1]} : vector<4x4xf32> to vector<4x1xf32>
    %21 = vector.extract_strided_slice %5 {offsets = [2, 0], sizes = [1, 16], strides = [1, 1]} : vector<4x16xf32> to vector<1x16xf32>
    %22 = vector.broadcast %20 : vector<4x1xf32> to vector<4x16xf32>
    %23 = vector.broadcast %21 : vector<1x16xf32> to vector<4x16xf32>
    %24 = arith.mulf %22, %23 : vector<4x16xf32>
    %25 = arith.addf %19, %24 : vector<4x16xf32>
    %26 = vector.extract_strided_slice %7 {offsets = [0, 3], sizes = [4, 1], strides = [1, 1]} : vector<4x4xf32> to vector<4x1xf32>
    %27 = vector.extract_strided_slice %5 {offsets = [3, 0], sizes = [1, 16], strides = [1, 1]} : vector<4x16xf32> to vector<1x16xf32>
    %28 = vector.broadcast %26 : vector<4x1xf32> to vector<4x16xf32>
    %29 = vector.broadcast %27 : vector<1x16xf32> to vector<4x16xf32>
    %30 = arith.mulf %28, %29 : vector<4x16xf32>
    %31 = arith.addf %25, %30 : vector<4x16xf32>
    %c1 = arith.constant 1 : index
    %c0_6 = arith.constant 0 : index
    %c0_7 = arith.constant 0 : index
    %32 = vector.load %arg2[%c1, %c0_6, %c0_7] : memref<3x4x4xf32, #tpu.memory_space<vmem>>, vector<1x4x4xf32>
    %33 = vector.shape_cast %32 : vector<1x4x4xf32> to vector<4x4xf32>
    %34 = vector.extract_strided_slice %33 {offsets = [0, 0], sizes = [4, 1], strides = [1, 1]} : vector<4x4xf32> to vector<4x1xf32>
    %35 = vector.extract_strided_slice %1 {offsets = [0, 0], sizes = [1, 16], strides = [1, 1]} : vector<4x16xf32> to vector<1x16xf32>
    %36 = vector.broadcast %34 : vector<4x1xf32> to vector<4x16xf32>
    %37 = vector.broadcast %35 : vector<1x16xf32> to vector<4x16xf32>
    %38 = arith.mulf %36, %37 : vector<4x16xf32>
    %39 = arith.addf %31, %38 : vector<4x16xf32>
    %40 = vector.extract_strided_slice %33 {offsets = [0, 1], sizes = [4, 1], strides = [1, 1]} : vector<4x4xf32> to vector<4x1xf32>
    %41 = vector.extract_strided_slice %1 {offsets = [1, 0], sizes = [1, 16], strides = [1, 1]} : vector<4x16xf32> to vector<1x16xf32>
    %42 = vector.broadcast %40 : vector<4x1xf32> to vector<4x16xf32>
    %43 = vector.broadcast %41 : vector<1x16xf32> to vector<4x16xf32>
    %44 = arith.mulf %42, %43 : vector<4x16xf32>
    %45 = arith.addf %39, %44 : vector<4x16xf32>
    %46 = vector.extract_strided_slice %33 {offsets = [0, 2], sizes = [4, 1], strides = [1, 1]} : vector<4x4xf32> to vector<4x1xf32>
    %47 = vector.extract_strided_slice %1 {offsets = [2, 0], sizes = [1, 16], strides = [1, 1]} : vector<4x16xf32> to vector<1x16xf32>
    %48 = vector.broadcast %46 : vector<4x1xf32> to vector<4x16xf32>
    %49 = vector.broadcast %47 : vector<1x16xf32> to vector<4x16xf32>
    %50 = arith.mulf %48, %49 : vector<4x16xf32>
    %51 = arith.addf %45, %50 : vector<4x16xf32>
    %52 = vector.extract_strided_slice %33 {offsets = [0, 3], sizes = [4, 1], strides = [1, 1]} : vector<4x4xf32> to vector<4x1xf32>
    %53 = vector.extract_strided_slice %1 {offsets = [3, 0], sizes = [1, 16], strides = [1, 1]} : vector<4x16xf32> to vector<1x16xf32>
    %54 = vector.broadcast %52 : vector<4x1xf32> to vector<4x16xf32>
    %55 = vector.broadcast %53 : vector<1x16xf32> to vector<4x16xf32>
    %56 = arith.mulf %54, %55 : vector<4x16xf32>
    %57 = arith.addf %51, %56 : vector<4x16xf32>
    %cst_8 = arith.constant 0.000000e+00 : f32
    %58 = vector.broadcast %cst_8 : f32 to vector<4x1xf32>
    %59 = vector.extract_strided_slice %1 {offsets = [0, 1], sizes = [4, 15], strides = [1, 1]} : vector<4x16xf32> to vector<4x15xf32>
    %60 = tpu.concatenate %59, %58 in 1 : vector<4x15xf32>, vector<4x1xf32> -> vector<4x16xf32>
    %c2 = arith.constant 2 : index
    %c0_9 = arith.constant 0 : index
    %c0_10 = arith.constant 0 : index
    %61 = vector.load %arg2[%c2, %c0_9, %c0_10] : memref<3x4x4xf32, #tpu.memory_space<vmem>>, vector<1x4x4xf32>
    %62 = vector.shape_cast %61 : vector<1x4x4xf32> to vector<4x4xf32>
    %63 = vector.extract_strided_slice %62 {offsets = [0, 0], sizes = [4, 1], strides = [1, 1]} : vector<4x4xf32> to vector<4x1xf32>
    %64 = vector.extract_strided_slice %60 {offsets = [0, 0], sizes = [1, 16], strides = [1, 1]} : vector<4x16xf32> to vector<1x16xf32>
    %65 = vector.broadcast %63 : vector<4x1xf32> to vector<4x16xf32>
    %66 = vector.broadcast %64 : vector<1x16xf32> to vector<4x16xf32>
    %67 = arith.mulf %65, %66 : vector<4x16xf32>
    %68 = arith.addf %57, %67 : vector<4x16xf32>
    %69 = vector.extract_strided_slice %62 {offsets = [0, 1], sizes = [4, 1], strides = [1, 1]} : vector<4x4xf32> to vector<4x1xf32>
    %70 = vector.extract_strided_slice %60 {offsets = [1, 0], sizes = [1, 16], strides = [1, 1]} : vector<4x16xf32> to vector<1x16xf32>
    %71 = vector.broadcast %69 : vector<4x1xf32> to vector<4x16xf32>
    %72 = vector.broadcast %70 : vector<1x16xf32> to vector<4x16xf32>
    %73 = arith.mulf %71, %72 : vector<4x16xf32>
    %74 = arith.addf %68, %73 : vector<4x16xf32>
    %75 = vector.extract_strided_slice %62 {offsets = [0, 2], sizes = [4, 1], strides = [1, 1]} : vector<4x4xf32> to vector<4x1xf32>
    %76 = vector.extract_strided_slice %60 {offsets = [2, 0], sizes = [1, 16], strides = [1, 1]} : vector<4x16xf32> to vector<1x16xf32>
    %77 = vector.broadcast %75 : vector<4x1xf32> to vector<4x16xf32>
    %78 = vector.broadcast %76 : vector<1x16xf32> to vector<4x16xf32>
    %79 = arith.mulf %77, %78 : vector<4x16xf32>
    %80 = arith.addf %74, %79 : vector<4x16xf32>
    %81 = vector.extract_strided_slice %62 {offsets = [0, 3], sizes = [4, 1], strides = [1, 1]} : vector<4x4xf32> to vector<4x1xf32>
    %82 = vector.extract_strided_slice %60 {offsets = [3, 0], sizes = [1, 16], strides = [1, 1]} : vector<4x16xf32> to vector<1x16xf32>
    %83 = vector.broadcast %81 : vector<4x1xf32> to vector<4x16xf32>
    %84 = vector.broadcast %82 : vector<1x16xf32> to vector<4x16xf32>
    %85 = arith.mulf %83, %84 : vector<4x16xf32>
    %86 = arith.addf %80, %85 : vector<4x16xf32>
    %c0_11 = arith.constant 0 : index
    %c0_12 = arith.constant 0 : index
    %c0_13 = arith.constant 0 : index
    %87 = vector.load %arg3[%c0_11, %c0_12, %c0_13] : memref<1x4x16xf32, #tpu.memory_space<vmem>>, vector<1x4x16xf32>
    %88 = vector.shape_cast %87 : vector<1x4x16xf32> to vector<4x16xf32>
    %89 = vector.shape_cast %86 : vector<4x16xf32> to vector<1x4x16xf32>
    tpu.vector_store %arg3[%c0_11, %c0_12, %c0_13], %89 {strides = array<i32>} : memref<1x4x16xf32, #tpu.memory_space<vmem>>, vector<1x4x16xf32>,
    %cst_14 = arith.constant dense<0.000000e+00> : vector<4xf32>
    %90 = vector.multi_reduction <add>, %86, %cst_14 [1] : vector<4x16xf32> to vector<4xf32>
    %91 = vector.shape_cast %90 : vector<4xf32> to vector<4x1xf32>
    %cst_15 = arith.constant 6.250000e-02 : f32
    %92 = vector.broadcast %cst_15 : f32 to vector<4x1xf32>
    %93 = arith.mulf %91, %92 : vector<4x1xf32>
    %94 = vector.broadcast %93 : vector<4x1xf32> to vector<4x16xf32>
    %95 = arith.subf %86, %94 : vector<4x16xf32>
    %c0_16 = arith.constant 0 : index
    %c0_17 = arith.constant 0 : index
    %c0_18 = arith.constant 0 : index
    %96 = vector.load %arg4[%c0_16, %c0_17, %c0_18] : memref<1x4x1xf32, #tpu.memory_space<vmem>>, vector<1x4x1xf32>
    %97 = vector.shape_cast %96 : vector<1x4x1xf32> to vector<4x1xf32>
    %98 = vector.shape_cast %93 : vector<4x1xf32> to vector<1x4x1xf32>
    tpu.vector_store %arg4[%c0_16, %c0_17, %c0_18], %98 {strides = array<i32>} : memref<1x4x1xf32, #tpu.memory_space<vmem>>, vector<1x4x1xf32>,
    %99 = arith.mulf %95, %95 : vector<4x16xf32>
    %cst_19 = arith.constant dense<0.000000e+00> : vector<4xf32>
    %100 = vector.multi_reduction <add>, %99, %cst_19 [1] : vector<4x16xf32> to vector<4xf32>
    %101 = vector.shape_cast %100 : vector<4xf32> to vector<4x1xf32>
    %c0_20 = arith.constant 0 : index
    %c0_21 = arith.constant 0 : index
    %c0_22 = arith.constant 0 : index
    %102 = vector.load %arg5[%c0_20, %c0_21, %c0_22] : memref<1x4x1xf32, #tpu.memory_space<vmem>>, vector<1x4x1xf32>
    %103 = vector.shape_cast %102 : vector<1x4x1xf32> to vector<4x1xf32>
    %104 = vector.shape_cast %101 : vector<4x1xf32> to vector<1x4x1xf32>
    tpu.vector_store %arg5[%c0_20, %c0_21, %c0_22], %104 {strides = array<i32>} : memref<1x4x1xf32, #tpu.memory_space<vmem>>, vector<1x4x1xf32>,
    return
  }
  func.func @transform_0(%arg0: i32) -> (i32, i32, i32) {
    %c0_i32 = arith.constant 0 : i32
    %c0_i32_0 = arith.constant 0 : i32
    %c0_i32_1 = arith.constant 0 : i32
    return %arg0, %c0_i32, %c0_i32_0 : i32, i32, i32
  }
  func.func @transform_1(%arg0: i32) -> (i32, i32, i32) {
    %c0_i32 = arith.constant 0 : i32
    %c0_i32_0 = arith.constant 0 : i32
    %c0_i32_1 = arith.constant 0 : i32
    %c0_i32_2 = arith.constant 0 : i32
    return %c0_i32, %c0_i32_0, %c0_i32_1 : i32, i32, i32
  }
  func.func @transform_2(%arg0: i32) -> (i32, i32, i32) {
    %c0_i32 = arith.constant 0 : i32
    %c0_i32_0 = arith.constant 0 : i32
    %c0_i32_1 = arith.constant 0 : i32
    return %arg0, %c0_i32, %c0_i32_0 : i32, i32, i32
  }
  func.func @transform_3(%arg0: i32) -> (i32, i32, i32) {
    %c0_i32 = arith.constant 0 : i32
    %c0_i32_0 = arith.constant 0 : i32
    %c0_i32_1 = arith.constant 0 : i32
    return %arg0, %c0_i32, %c0_i32_0 : i32, i32, i32
  }
  func.func @transform_4(%arg0: i32) -> (i32, i32, i32) {
    %c0_i32 = arith.constant 0 : i32
    %c0_i32_0 = arith.constant 0 : i32
    %c0_i32_1 = arith.constant 0 : i32
    return %arg0, %c0_i32, %c0_i32_0 : i32, i32, i32
  }
}

module attributes {stable_mosaic.version = 11 : i64} {
  func.func @_bn2_residual_relu_kernel(%arg0: i32, %arg1: memref<1x4x16xf32, #tpu.memory_space<vmem>>, %arg2: memref<1x4x16xf32, #tpu.memory_space<vmem>>, %arg3: memref<4x1xf32, #tpu.memory_space<vmem>>, %arg4: memref<4x1xf32, #tpu.memory_space<vmem>>, %arg5: memref<1x4x16xf32, #tpu.memory_space<vmem>>) attributes {dimension_semantics = [#tpu.dimension_semantics<parallel>], iteration_bounds = array<i64: 2>, scalar_prefetch = 0 : i64, scratch_operands = 0 : i64, tpu.core_type = #tpu.core_type<tc>, window_params = [{transform_indices = @transform_0, window_bounds = array<i64: 1, 4, 16>}, {transform_indices = @transform_1, window_bounds = array<i64: 1, 4, 16>}, {pipeline_mode = #tpu.pipeline_mode<synchronous>, transform_indices = @transform_2, window_bounds = array<i64: 4, 1>}, {pipeline_mode = #tpu.pipeline_mode<synchronous>, transform_indices = @transform_3, window_bounds = array<i64: 4, 1>}, {transform_indices = @transform_4, window_bounds = array<i64: 1, 4, 16>}]} {
    %c0 = arith.constant 0 : index
    %c0_0 = arith.constant 0 : index
    %c0_1 = arith.constant 0 : index
    %0 = vector.load %arg1[%c0, %c0_0, %c0_1] : memref<1x4x16xf32, #tpu.memory_space<vmem>>, vector<1x4x16xf32>
    %1 = vector.shape_cast %0 : vector<1x4x16xf32> to vector<4x16xf32>
    %c0_2 = arith.constant 0 : index
    %c0_3 = arith.constant 0 : index
    %2 = vector.load %arg3[%c0_2, %c0_3] : memref<4x1xf32, #tpu.memory_space<vmem>>, vector<4x1xf32>
    %3 = vector.broadcast %2 : vector<4x1xf32> to vector<4x16xf32>
    %4 = arith.mulf %1, %3 : vector<4x16xf32>
    %c0_4 = arith.constant 0 : index
    %c0_5 = arith.constant 0 : index
    %5 = vector.load %arg4[%c0_4, %c0_5] : memref<4x1xf32, #tpu.memory_space<vmem>>, vector<4x1xf32>
    %6 = vector.broadcast %5 : vector<4x1xf32> to vector<4x16xf32>
    %7 = arith.addf %4, %6 : vector<4x16xf32>
    %c0_6 = arith.constant 0 : index
    %c0_7 = arith.constant 0 : index
    %c0_8 = arith.constant 0 : index
    %8 = vector.load %arg2[%c0_6, %c0_7, %c0_8] : memref<1x4x16xf32, #tpu.memory_space<vmem>>, vector<1x4x16xf32>
    %9 = vector.shape_cast %8 : vector<1x4x16xf32> to vector<4x16xf32>
    %10 = arith.addf %7, %9 : vector<4x16xf32>
    %cst = arith.constant 0.000000e+00 : f32
    %11 = vector.broadcast %cst : f32 to vector<4x16xf32>
    %12 = arith.maximumf %10, %11 : vector<4x16xf32>
    %c0_9 = arith.constant 0 : index
    %c0_10 = arith.constant 0 : index
    %c0_11 = arith.constant 0 : index
    %13 = vector.load %arg5[%c0_9, %c0_10, %c0_11] : memref<1x4x16xf32, #tpu.memory_space<vmem>>, vector<1x4x16xf32>
    %14 = vector.shape_cast %13 : vector<1x4x16xf32> to vector<4x16xf32>
    %15 = vector.shape_cast %12 : vector<4x16xf32> to vector<1x4x16xf32>
    tpu.vector_store %arg5[%c0_9, %c0_10, %c0_11], %15 {strides = array<i32>} : memref<1x4x16xf32, #tpu.memory_space<vmem>>, vector<1x4x16xf32>,
    return
  }
  func.func @transform_0(%arg0: i32) -> (i32, i32, i32) {
    %c0_i32 = arith.constant 0 : i32
    %c0_i32_0 = arith.constant 0 : i32
    %c0_i32_1 = arith.constant 0 : i32
    return %arg0, %c0_i32, %c0_i32_0 : i32, i32, i32
  }
  func.func @transform_1(%arg0: i32) -> (i32, i32, i32) {
    %c0_i32 = arith.constant 0 : i32
    %c0_i32_0 = arith.constant 0 : i32
    %c0_i32_1 = arith.constant 0 : i32
    return %arg0, %c0_i32, %c0_i32_0 : i32, i32, i32
  }
  func.func @transform_2(%arg0: i32) -> (i32, i32) {
    %c0_i32 = arith.constant 0 : i32
    %c0_i32_0 = arith.constant 0 : i32
    %c0_i32_1 = arith.constant 0 : i32
    return %c0_i32, %c0_i32_0 : i32, i32
  }
  func.func @transform_3(%arg0: i32) -> (i32, i32) {
    %c0_i32 = arith.constant 0 : i32
    %c0_i32_0 = arith.constant 0 : i32
    %c0_i32_1 = arith.constant 0 : i32
    return %c0_i32, %c0_i32_0 : i32, i32
  }
  func.func @transform_4(%arg0: i32) -> (i32, i32, i32) {
    %c0_i32 = arith.constant 0 : i32
    %c0_i32_0 = arith.constant 0 : i32
    %c0_i32_1 = arith.constant 0 : i32
    return %arg0, %c0_i32, %c0_i32_0 : i32, i32, i32
  }
}

module attributes {stable_mosaic.version = 11 : i64} {
  func.func @_bn1_relu_conv2_stats_kernel(%arg0: i32, %arg1: memref<1x4x16xf32, #tpu.memory_space<vmem>>, %arg2: memref<4x1xf32, #tpu.memory_space<vmem>>, %arg3: memref<4x1xf32, #tpu.memory_space<vmem>>, %arg4: memref<3x4x4xf32, #tpu.memory_space<vmem>>, %arg5: memref<1x4x16xf32, #tpu.memory_space<vmem>>, %arg6: memref<1x4x1xf32, #tpu.memory_space<vmem>>, %arg7: memref<1x4x1xf32, #tpu.memory_space<vmem>>) attributes {dimension_semantics = [#tpu.dimension_semantics<parallel>], iteration_bounds = array<i64: 2>, scalar_prefetch = 0 : i64, scratch_operands = 0 : i64, tpu.core_type = #tpu.core_type<tc>, window_params = [{transform_indices = @transform_0, window_bounds = array<i64: 1, 4, 16>}, {pipeline_mode = #tpu.pipeline_mode<synchronous>, transform_indices = @transform_1, window_bounds = array<i64: 4, 1>}, {pipeline_mode = #tpu.pipeline_mode<synchronous>, transform_indices = @transform_2, window_bounds = array<i64: 4, 1>}, {pipeline_mode = #tpu.pipeline_mode<synchronous>, transform_indices = @transform_3, window_bounds = array<i64: 3, 4, 4>}, {transform_indices = @transform_4, window_bounds = array<i64: 1, 4, 16>}, {transform_indices = @transform_5, window_bounds = array<i64: 1, 4, 1>}, {transform_indices = @transform_6, window_bounds = array<i64: 1, 4, 1>}]} {
    %c0 = arith.constant 0 : index
    %c0_0 = arith.constant 0 : index
    %c0_1 = arith.constant 0 : index
    %0 = vector.load %arg1[%c0, %c0_0, %c0_1] : memref<1x4x16xf32, #tpu.memory_space<vmem>>, vector<1x4x16xf32>
    %1 = vector.shape_cast %0 : vector<1x4x16xf32> to vector<4x16xf32>
    %c0_2 = arith.constant 0 : index
    %c0_3 = arith.constant 0 : index
    %2 = vector.load %arg2[%c0_2, %c0_3] : memref<4x1xf32, #tpu.memory_space<vmem>>, vector<4x1xf32>
    %3 = vector.broadcast %2 : vector<4x1xf32> to vector<4x16xf32>
    %4 = arith.mulf %1, %3 : vector<4x16xf32>
    %c0_4 = arith.constant 0 : index
    %c0_5 = arith.constant 0 : index
    %5 = vector.load %arg3[%c0_4, %c0_5] : memref<4x1xf32, #tpu.memory_space<vmem>>, vector<4x1xf32>
    %6 = vector.broadcast %5 : vector<4x1xf32> to vector<4x16xf32>
    %7 = arith.addf %4, %6 : vector<4x16xf32>
    %cst = arith.constant 0.000000e+00 : f32
    %8 = vector.broadcast %cst : f32 to vector<4x16xf32>
    %9 = arith.maximumf %7, %8 : vector<4x16xf32>
    %cst_6 = arith.constant 0.000000e+00 : f32
    %10 = vector.broadcast %cst_6 : f32 to vector<4x16xf32>
    %cst_7 = arith.constant 0.000000e+00 : f32
    %11 = vector.broadcast %cst_7 : f32 to vector<4x1xf32>
    %12 = vector.extract_strided_slice %9 {offsets = [0, 0], sizes = [4, 15], strides = [1, 1]} : vector<4x16xf32> to vector<4x15xf32>
    %13 = tpu.concatenate %11, %12 in 1 : vector<4x1xf32>, vector<4x15xf32> -> vector<4x16xf32>
    %c0_8 = arith.constant 0 : index
    %c0_9 = arith.constant 0 : index
    %c0_10 = arith.constant 0 : index
    %14 = vector.load %arg4[%c0_8, %c0_9, %c0_10] : memref<3x4x4xf32, #tpu.memory_space<vmem>>, vector<1x4x4xf32>
    %15 = vector.shape_cast %14 : vector<1x4x4xf32> to vector<4x4xf32>
    %16 = vector.extract_strided_slice %15 {offsets = [0, 0], sizes = [4, 1], strides = [1, 1]} : vector<4x4xf32> to vector<4x1xf32>
    %17 = vector.extract_strided_slice %13 {offsets = [0, 0], sizes = [1, 16], strides = [1, 1]} : vector<4x16xf32> to vector<1x16xf32>
    %18 = vector.broadcast %16 : vector<4x1xf32> to vector<4x16xf32>
    %19 = vector.broadcast %17 : vector<1x16xf32> to vector<4x16xf32>
    %20 = arith.mulf %18, %19 : vector<4x16xf32>
    %21 = arith.addf %10, %20 : vector<4x16xf32>
    %22 = vector.extract_strided_slice %15 {offsets = [0, 1], sizes = [4, 1], strides = [1, 1]} : vector<4x4xf32> to vector<4x1xf32>
    %23 = vector.extract_strided_slice %13 {offsets = [1, 0], sizes = [1, 16], strides = [1, 1]} : vector<4x16xf32> to vector<1x16xf32>
    %24 = vector.broadcast %22 : vector<4x1xf32> to vector<4x16xf32>
    %25 = vector.broadcast %23 : vector<1x16xf32> to vector<4x16xf32>
    %26 = arith.mulf %24, %25 : vector<4x16xf32>
    %27 = arith.addf %21, %26 : vector<4x16xf32>
    %28 = vector.extract_strided_slice %15 {offsets = [0, 2], sizes = [4, 1], strides = [1, 1]} : vector<4x4xf32> to vector<4x1xf32>
    %29 = vector.extract_strided_slice %13 {offsets = [2, 0], sizes = [1, 16], strides = [1, 1]} : vector<4x16xf32> to vector<1x16xf32>
    %30 = vector.broadcast %28 : vector<4x1xf32> to vector<4x16xf32>
    %31 = vector.broadcast %29 : vector<1x16xf32> to vector<4x16xf32>
    %32 = arith.mulf %30, %31 : vector<4x16xf32>
    %33 = arith.addf %27, %32 : vector<4x16xf32>
    %34 = vector.extract_strided_slice %15 {offsets = [0, 3], sizes = [4, 1], strides = [1, 1]} : vector<4x4xf32> to vector<4x1xf32>
    %35 = vector.extract_strided_slice %13 {offsets = [3, 0], sizes = [1, 16], strides = [1, 1]} : vector<4x16xf32> to vector<1x16xf32>
    %36 = vector.broadcast %34 : vector<4x1xf32> to vector<4x16xf32>
    %37 = vector.broadcast %35 : vector<1x16xf32> to vector<4x16xf32>
    %38 = arith.mulf %36, %37 : vector<4x16xf32>
    %39 = arith.addf %33, %38 : vector<4x16xf32>
    %c1 = arith.constant 1 : index
    %c0_11 = arith.constant 0 : index
    %c0_12 = arith.constant 0 : index
    %40 = vector.load %arg4[%c1, %c0_11, %c0_12] : memref<3x4x4xf32, #tpu.memory_space<vmem>>, vector<1x4x4xf32>
    %41 = vector.shape_cast %40 : vector<1x4x4xf32> to vector<4x4xf32>
    %42 = vector.extract_strided_slice %41 {offsets = [0, 0], sizes = [4, 1], strides = [1, 1]} : vector<4x4xf32> to vector<4x1xf32>
    %43 = vector.extract_strided_slice %9 {offsets = [0, 0], sizes = [1, 16], strides = [1, 1]} : vector<4x16xf32> to vector<1x16xf32>
    %44 = vector.broadcast %42 : vector<4x1xf32> to vector<4x16xf32>
    %45 = vector.broadcast %43 : vector<1x16xf32> to vector<4x16xf32>
    %46 = arith.mulf %44, %45 : vector<4x16xf32>
    %47 = arith.addf %39, %46 : vector<4x16xf32>
    %48 = vector.extract_strided_slice %41 {offsets = [0, 1], sizes = [4, 1], strides = [1, 1]} : vector<4x4xf32> to vector<4x1xf32>
    %49 = vector.extract_strided_slice %9 {offsets = [1, 0], sizes = [1, 16], strides = [1, 1]} : vector<4x16xf32> to vector<1x16xf32>
    %50 = vector.broadcast %48 : vector<4x1xf32> to vector<4x16xf32>
    %51 = vector.broadcast %49 : vector<1x16xf32> to vector<4x16xf32>
    %52 = arith.mulf %50, %51 : vector<4x16xf32>
    %53 = arith.addf %47, %52 : vector<4x16xf32>
    %54 = vector.extract_strided_slice %41 {offsets = [0, 2], sizes = [4, 1], strides = [1, 1]} : vector<4x4xf32> to vector<4x1xf32>
    %55 = vector.extract_strided_slice %9 {offsets = [2, 0], sizes = [1, 16], strides = [1, 1]} : vector<4x16xf32> to vector<1x16xf32>
    %56 = vector.broadcast %54 : vector<4x1xf32> to vector<4x16xf32>
    %57 = vector.broadcast %55 : vector<1x16xf32> to vector<4x16xf32>
    %58 = arith.mulf %56, %57 : vector<4x16xf32>
    %59 = arith.addf %53, %58 : vector<4x16xf32>
    %60 = vector.extract_strided_slice %41 {offsets = [0, 3], sizes = [4, 1], strides = [1, 1]} : vector<4x4xf32> to vector<4x1xf32>
    %61 = vector.extract_strided_slice %9 {offsets = [3, 0], sizes = [1, 16], strides = [1, 1]} : vector<4x16xf32> to vector<1x16xf32>
    %62 = vector.broadcast %60 : vector<4x1xf32> to vector<4x16xf32>
    %63 = vector.broadcast %61 : vector<1x16xf32> to vector<4x16xf32>
    %64 = arith.mulf %62, %63 : vector<4x16xf32>
    %65 = arith.addf %59, %64 : vector<4x16xf32>
    %cst_13 = arith.constant 0.000000e+00 : f32
    %66 = vector.broadcast %cst_13 : f32 to vector<4x1xf32>
    %67 = vector.extract_strided_slice %9 {offsets = [0, 1], sizes = [4, 15], strides = [1, 1]} : vector<4x16xf32> to vector<4x15xf32>
    %68 = tpu.concatenate %67, %66 in 1 : vector<4x15xf32>, vector<4x1xf32> -> vector<4x16xf32>
    %c2 = arith.constant 2 : index
    %c0_14 = arith.constant 0 : index
    %c0_15 = arith.constant 0 : index
    %69 = vector.load %arg4[%c2, %c0_14, %c0_15] : memref<3x4x4xf32, #tpu.memory_space<vmem>>, vector<1x4x4xf32>
    %70 = vector.shape_cast %69 : vector<1x4x4xf32> to vector<4x4xf32>
    %71 = vector.extract_strided_slice %70 {offsets = [0, 0], sizes = [4, 1], strides = [1, 1]} : vector<4x4xf32> to vector<4x1xf32>
    %72 = vector.extract_strided_slice %68 {offsets = [0, 0], sizes = [1, 16], strides = [1, 1]} : vector<4x16xf32> to vector<1x16xf32>
    %73 = vector.broadcast %71 : vector<4x1xf32> to vector<4x16xf32>
    %74 = vector.broadcast %72 : vector<1x16xf32> to vector<4x16xf32>
    %75 = arith.mulf %73, %74 : vector<4x16xf32>
    %76 = arith.addf %65, %75 : vector<4x16xf32>
    %77 = vector.extract_strided_slice %70 {offsets = [0, 1], sizes = [4, 1], strides = [1, 1]} : vector<4x4xf32> to vector<4x1xf32>
    %78 = vector.extract_strided_slice %68 {offsets = [1, 0], sizes = [1, 16], strides = [1, 1]} : vector<4x16xf32> to vector<1x16xf32>
    %79 = vector.broadcast %77 : vector<4x1xf32> to vector<4x16xf32>
    %80 = vector.broadcast %78 : vector<1x16xf32> to vector<4x16xf32>
    %81 = arith.mulf %79, %80 : vector<4x16xf32>
    %82 = arith.addf %76, %81 : vector<4x16xf32>
    %83 = vector.extract_strided_slice %70 {offsets = [0, 2], sizes = [4, 1], strides = [1, 1]} : vector<4x4xf32> to vector<4x1xf32>
    %84 = vector.extract_strided_slice %68 {offsets = [2, 0], sizes = [1, 16], strides = [1, 1]} : vector<4x16xf32> to vector<1x16xf32>
    %85 = vector.broadcast %83 : vector<4x1xf32> to vector<4x16xf32>
    %86 = vector.broadcast %84 : vector<1x16xf32> to vector<4x16xf32>
    %87 = arith.mulf %85, %86 : vector<4x16xf32>
    %88 = arith.addf %82, %87 : vector<4x16xf32>
    %89 = vector.extract_strided_slice %70 {offsets = [0, 3], sizes = [4, 1], strides = [1, 1]} : vector<4x4xf32> to vector<4x1xf32>
    %90 = vector.extract_strided_slice %68 {offsets = [3, 0], sizes = [1, 16], strides = [1, 1]} : vector<4x16xf32> to vector<1x16xf32>
    %91 = vector.broadcast %89 : vector<4x1xf32> to vector<4x16xf32>
    %92 = vector.broadcast %90 : vector<1x16xf32> to vector<4x16xf32>
    %93 = arith.mulf %91, %92 : vector<4x16xf32>
    %94 = arith.addf %88, %93 : vector<4x16xf32>
    %c0_16 = arith.constant 0 : index
    %c0_17 = arith.constant 0 : index
    %c0_18 = arith.constant 0 : index
    %95 = vector.load %arg5[%c0_16, %c0_17, %c0_18] : memref<1x4x16xf32, #tpu.memory_space<vmem>>, vector<1x4x16xf32>
    %96 = vector.shape_cast %95 : vector<1x4x16xf32> to vector<4x16xf32>
    %97 = vector.shape_cast %94 : vector<4x16xf32> to vector<1x4x16xf32>
    tpu.vector_store %arg5[%c0_16, %c0_17, %c0_18], %97 {strides = array<i32>} : memref<1x4x16xf32, #tpu.memory_space<vmem>>, vector<1x4x16xf32>,
    %cst_19 = arith.constant dense<0.000000e+00> : vector<4xf32>
    %98 = vector.multi_reduction <add>, %94, %cst_19 [1] : vector<4x16xf32> to vector<4xf32>
    %99 = vector.shape_cast %98 : vector<4xf32> to vector<4x1xf32>
    %cst_20 = arith.constant 6.250000e-02 : f32
    %100 = vector.broadcast %cst_20 : f32 to vector<4x1xf32>
    %101 = arith.mulf %99, %100 : vector<4x1xf32>
    %102 = vector.broadcast %101 : vector<4x1xf32> to vector<4x16xf32>
    %103 = arith.subf %94, %102 : vector<4x16xf32>
    %c0_21 = arith.constant 0 : index
    %c0_22 = arith.constant 0 : index
    %c0_23 = arith.constant 0 : index
    %104 = vector.load %arg6[%c0_21, %c0_22, %c0_23] : memref<1x4x1xf32, #tpu.memory_space<vmem>>, vector<1x4x1xf32>
    %105 = vector.shape_cast %104 : vector<1x4x1xf32> to vector<4x1xf32>
    %106 = vector.shape_cast %101 : vector<4x1xf32> to vector<1x4x1xf32>
    tpu.vector_store %arg6[%c0_21, %c0_22, %c0_23], %106 {strides = array<i32>} : memref<1x4x1xf32, #tpu.memory_space<vmem>>, vector<1x4x1xf32>,
    %107 = arith.mulf %103, %103 : vector<4x16xf32>
    %cst_24 = arith.constant dense<0.000000e+00> : vector<4xf32>
    %108 = vector.multi_reduction <add>, %107, %cst_24 [1] : vector<4x16xf32> to vector<4xf32>
    %109 = vector.shape_cast %108 : vector<4xf32> to vector<4x1xf32>
    %c0_25 = arith.constant 0 : index
    %c0_26 = arith.constant 0 : index
    %c0_27 = arith.constant 0 : index
    %110 = vector.load %arg7[%c0_25, %c0_26, %c0_27] : memref<1x4x1xf32, #tpu.memory_space<vmem>>, vector<1x4x1xf32>
    %111 = vector.shape_cast %110 : vector<1x4x1xf32> to vector<4x1xf32>
    %112 = vector.shape_cast %109 : vector<4x1xf32> to vector<1x4x1xf32>
    tpu.vector_store %arg7[%c0_25, %c0_26, %c0_27], %112 {strides = array<i32>} : memref<1x4x1xf32, #tpu.memory_space<vmem>>, vector<1x4x1xf32>,
    return
  }
  func.func @transform_0(%arg0: i32) -> (i32, i32, i32) {
    %c0_i32 = arith.constant 0 : i32
    %c0_i32_0 = arith.constant 0 : i32
    %c0_i32_1 = arith.constant 0 : i32
    return %arg0, %c0_i32, %c0_i32_0 : i32, i32, i32
  }
  func.func @transform_1(%arg0: i32) -> (i32, i32) {
    %c0_i32 = arith.constant 0 : i32
    %c0_i32_0 = arith.constant 0 : i32
    %c0_i32_1 = arith.constant 0 : i32
    return %c0_i32, %c0_i32_0 : i32, i32
  }
  func.func @transform_2(%arg0: i32) -> (i32, i32) {
    %c0_i32 = arith.constant 0 : i32
    %c0_i32_0 = arith.constant 0 : i32
    %c0_i32_1 = arith.constant 0 : i32
    return %c0_i32, %c0_i32_0 : i32, i32
  }
  func.func @transform_3(%arg0: i32) -> (i32, i32, i32) {
    %c0_i32 = arith.constant 0 : i32
    %c0_i32_0 = arith.constant 0 : i32
    %c0_i32_1 = arith.constant 0 : i32
    %c0_i32_2 = arith.constant 0 : i32
    return %c0_i32, %c0_i32_0, %c0_i32_1 : i32, i32, i32
  }
  func.func @transform_4(%arg0: i32) -> (i32, i32, i32) {
    %c0_i32 = arith.constant 0 : i32
    %c0_i32_0 = arith.constant 0 : i32
    %c0_i32_1 = arith.constant 0 : i32
    return %arg0, %c0_i32, %c0_i32_0 : i32, i32, i32
  }
  func.func @transform_5(%arg0: i32) -> (i32, i32, i32) {
    %c0_i32 = arith.constant 0 : i32
    %c0_i32_0 = arith.constant 0 : i32
    %c0_i32_1 = arith.constant 0 : i32
    return %arg0, %c0_i32, %c0_i32_0 : i32, i32, i32
  }
  func.func @transform_6(%arg0: i32) -> (i32, i32, i32) {
    %c0_i32 = arith.constant 0 : i32
    %c0_i32_0 = arith.constant 0 : i32
    %c0_i32_1 = arith.constant 0 : i32
    return %arg0, %c0_i32, %c0_i32_0 : i32, i32, i32
  }
}

</mosaic_0001>

<bundles_post_ra>
// kernel: basic_block_1d.5
= control target key start
LH: loop header
LB: loop body
LE: loop exit
PB: predicated region body
PF: predicated region fallthrough
CT: control target
= control target key end

     0   :  { %9 = vsyncpa [#allocation3], 0  ;;  %s567_s0 = inlined_call_operand.vmem [shape: f32[2,4,16], index: 0, kind: input, shape index: {}]   ;;  %s568_s1 = inlined_call_operand.vmem [shape: f32[2,4,16], index: 1, kind: input, shape index: {}]   ;;  %s569_s2 = inlined_call_operand.vmem [shape: f32[4,1], index: 2, kind: input, shape index: {}]   ;;  %s570_s3 = inlined_call_operand.vmem [shape: f32[4,1], index: 3, kind: input, shape index: {}]   ;;  %s571_s4 = inlined_call_operand.hbm [shape: f32[2,4,16], index: 4, kind: output, shape index: {}]  }
   0x1   :  { %11 = vsyncpa [#allocation3 + $0x1], 0  ;;  %s458_s15 = smov 0   ;;  %s460_s16 = smov 0  }
   0x2   :  { %s462_s17 = smov 0   ;;  %s464_s18 = smov 0  }
   0x3 LB: > { %s479_s19 = sadd.s32 4294967295, %s429_s18   ;;  %s315_s20 = sadd.s32 4294967294, %s429_s18   ;;  %s429_s18 = sphi %s464_s18, %s577_s18   ;;  %s425_s17 = sphi %s462_s17, %s576_s17   ;;  %s421_s16 = sphi %s460_s16, %s575_s16   ;;  %s417_s15 = sphi %s458_s15, %s574_s15  }
   0x4   : > { %s483_s21 = sadd.s32 1, %s429_s18   ;;  %s118_s22 = sadd.s32 1, %s425_s17 }
   0x5   : > { %s115_s23 = ssub.s32 %s429_s18, %s483_s21  ;;  %p128_p0 = scmp.ne.s32.totalorder %s425_s17, %s421_s16 }
   0x6   : > { %p116_p1 = scmp.eq.s32.totalorder %s115_s23, 0  ;;  %p129_p2 = scmp.eq.s32.totalorder %s479_s19, 1 }
   0x7   : > { %p134_p3 = scmp.ne.s32.totalorder %s421_s16, %s417_s15  ;;  %p135_p4 = scmp.eq.s32.totalorder %s315_s20, 1 }
   0x8   : > { %s494_s24 = scalar_select %p116_p1, %s425_s17, %s118_s22  }
   0x9   : > { %p496_p5 = por %p129_p2, %p128_p0  ;;  %p500_p6 = por %p135_p4, %p134_p3 }
   0xa   : > { %p318_p7 = scmp.ge.s32.totalorder %s429_s18, 1  ;;  %p173_p8 = scmp.lt.s32.totalorder %s429_s18, 3 }
   0xc   : > { %p174_p9 = pnand %p318_p7, %p173_p8 }
   0xd   : > { %v211_v0 = vld [vmem:[%s569_s2] sm:$0xf] (!%p174_p9)  ;;  %v431_v1 = vmov (!%p174_p9), 0   ;;  %p202_p10 = scmp.lt.s32.totalorder (!%p174_p9), %s479_s19, 1  ;;  %s199_s10 = sand.u32 (!%p174_p9), 1, %s421_s16   ;;  %vm228_vm0 = vcmask (!%p174_p9), 125952  }
   0xe   : > { %177 = sbr.rel (%p174_p9) target bundleno = 167 (0xa7), region = 36  ;;  %366 = vset.pattern.permute.xlu0 (!%p174_p9), %v431_v1  ;;  %v218_v2 = vld [vmem:[%s570_s3] sm:$0xf] (!%p174_p9)  ;;  %s319_s11 = sshll.u32 (!%p174_p9), %s199_s10, 2 }
   0xf   : > { %214 = vperm.xlu0 (!%p174_p9), %366, %v211_v0   ;;  %s323_s20 = sshll.u32 (!%p174_p9), %s479_s19, 6  ;;  %s201_s22 = scalar_lea.vmem (!%p174_p9), [#allocation2], %s319_s11 }
  0x10   : > { %s244_s23 = sshll.u32 (!%p174_p9), %s201_s22, 4  ;;  %s525_s29 = scalar_lea.hbm (!%p174_p9), %s571_s4, %s323_s20  ;;  %s527_s23 = int_to_ptr.vmem [resolvable:$true] %s244_s23 }
  0x11   : > { %s231_s30 = scalar_lea.sflag (!%p174_p9), [#allocation3], %s199_s10 }
  0x13   : > { %221 = vperm.xlu0 (!%p174_p9), %366, %v218_v2  }
  0x15   : > { %s203_s5 = scalar_select %p202_p10, %s479_s19, 1 }
  0x16   : > { %s432_s19 = smov [#allocation2]  }
  0x17   : > { %s320_s6 = sshll.u32 %s203_s5, 2  ;;  %s367_s5 = scalar_lea.vmem %s527_s23, 64 }
  0x18   : > { %s205_s9 = scalar_lea.vmem %s567_s0, %s320_s6  ;;  %s209_s14 = scalar_lea.vmem %s568_s1, %s320_s6 }
  0x19   : > { %v210_v4 = vld [vmem:[%s205_s9] sm:$0xf]  ;;  %p368_p11 = scmp.ne.s32.totalorder %s527_s23, %s367_s5  ;;  %s371_s6 = sshll.u32 %s432_s19, 4  ;;  %s372_s6 = int_to_ptr.vmem [resolvable:$false] %s371_s6 }
  0x1a   : > { %v225_v7 = vld [vmem:[%s209_s14] sm:$0xf]  ;;  %s373_s7 = scalar_lea.vmem %s372_s6, 128  ;;  %p374_p0 = scmp.lt.s32.totalorder %s527_s23, %s372_s6 }
  0x1b   : > { %p369_p12 = pnand %p368_p11, %p496_p5  ;;  %p375_p1 = scmp.lt.s32.totalorder %s373_s7, %s367_s5 }
  0x1d   : > { %p370_p13 = pneg %p369_p12  ;;  %p376_p2 = por %p375_p1, %p374_p0 }
  0x1f   : > { %p377_p3 = pnand %p376_p2, %p370_p13 }
  0x8e   : > { %v215_v3 = vpop.permute.xlu0 %214 }
  0x8f   : > { %v217_v5 = vmul.f32 %v215_v3, %v210_v4 }
  0x92   : > { %v222_v6 = vpop.permute.xlu0 %221 }
  0x93   : > { %v224_v8 = vadd.f32 %v222_v6, %v217_v5 }
  0x95   : > { %v226_v9 = vadd.f32 %v225_v7, %v224_v8 }
  0x97   : > { %v227_v10 = vmax.f32 %v226_v9, 0.0 }
  0x99   : > { %229 = vst.msk [vmem:[%s201_s22] sm:$0xf] %vm228_vm0, %v227_v10 }
  0x9a   : > { %380 = shalt.err (!%p377_p3)
}
  0x9b   : > { %s381_s8 = scalar_lea.hbm %s525_s29, 64  ;;  %s385_s11 = scalar_lea.hbm %s571_s4, 128 }
  0x9c   : > { %p382_p4 = scmp.ne.s32.totalorder %s525_s29, %s381_s8  ;;  %p386_p9 = scmp.lt.u32.totalorder %s525_s29, %s571_s4 }
  0x9d   : > { %p387_p10 = scmp.lt.u32.totalorder %s385_s11, %s381_s8  ;;  %p389_p12 = scmp.lt.u32.totalorder %s381_s8, %s525_s29 }
  0x9e   : > { %p383_p7 = pnand %p382_p4, %p496_p5 }
  0x9f   : > { %p388_p11 = por %p387_p10, %p386_p9 }
  0xa0   : > { %p384_p8 = pneg %p383_p7 }
  0xa1   : > { %p390_p13 = por %p389_p12, %p388_p11 }
  0xa3   : > { %p391_p0 = pnand %p390_p13, %p384_p8 }
  0xa5   : > { %394 = shalt.err (!%p391_p0)
}
  0xa6   : > { %326 = dma.vmem_to_hbm [thread:$0]  (%p496_p5), %s527_s23, 64, %s525_s29, %s231_s30  }
  0xa7 PF: > { %p332_p1 = scmp.ge.s32.totalorder %s429_s18, 2  ;;  %s256_s14 = sand.u32 1, %s417_s15  }
  0xa8   : > { %s257_s20 = scalar_lea.sflag [#allocation3], %s256_s14 }
  0xa9   : > { %p329_p2 = pnand %p332_p1, %p500_p6 }
  0xab   : > { %412 = dma.done.wait (!%p329_p2), %s257_s20, 64  }
  0xac   : > { %414 = vsyncadd (!%p329_p2), %s257_s20, 4294967232  ;;  %p14_p3 = scmp.ge.s32.totalorder %s483_s21, 4   ;;  %s574_s15 = smov %s421_s16 }
  0xad   : > { %s575_s16 = smov %s425_s17  ;;  %s576_s17 = smov %s494_s24 }
  0xae   : > { %s577_s18 = smov %s483_s21  ;;  %16 = sbr.rel (!%p14_p3) target bundleno = 3 (0x3), region = 74 }
  0xb5   :  { %262 = vsyncpa [#allocation3], 1 }
  0xb6   :  { %264 = vsyncpa [#allocation3 + $0x1], 1 }

// kernel: basic_block_1d.3
= control target key start
LH: loop header
LB: loop body
LE: loop exit
PB: predicated region body
PF: predicated region fallthrough
CT: control target
= control target key end

     0   :  { %10 = vsyncpa [#allocation3], 0  ;;  %s635_s15 = smov 0   ;;  %s711_s0 = inlined_call_operand.vmem [shape: f32[2,4,16], index: 0, kind: input, shape index: {}]   ;;  %s712_s1 = inlined_call_operand.hbm [shape: f32[3,4,4], index: 1, kind: input, shape index: {}]   ;;  %s713_s2 = inlined_call_operand.vmem [shape: f32[2,4,16], index: 2, kind: output, shape index: {0}]   ;;  %s714_s3 = inlined_call_operand.vmem [shape: f32[2,4,1], index: 3, kind: output, shape index: {1}]   ;;  %s715_s4 = inlined_call_operand.vmem [shape: f32[2,4,1], index: 4, kind: output, shape index: {2}]  }
   0x1 LB: > { %s641_s16 = sadd.s32 4294967295, %s599_s15   ;;  %p512_p0 = scmp.ge.s32.totalorder %s599_s15, 1  ;;  %s599_s15 = sphi %s635_s15, %s16_s15  }
   0x2   : > { %p146_p1 = scmp.lt.s32.totalorder %s599_s15, 3  ;;  %s601_s17 = smov [#allocation2]  }
   0x3   : > { %s158_s18 = sshll.u32 %s601_s17, 4  ;;  %p716_p3 = scmp.eq.s32.totalorder %s641_s16, 0  ;;  %s159_s18 = int_to_ptr.vmem [resolvable:$true] %s158_s18 }
   0x4   : > { %p645_p2 = pnand %p512_p0, %p146_p1  ;;  %s561_s23 = scalar_lea.hbm %s712_s1, 192 }
   0x5   : > { %p562_p6 = scmp.ne.s32.totalorder %s712_s1, %s561_s23  ;;  %p568_p10 = scmp.lt.u32.totalorder %s561_s23, %s712_s1 }
   0x6   : > { %s718_s19 = scalar_select %p645_p2, 1, 0 }
   0x7   : > { %p527_p4 = pneg %p645_p2 }
   0x9   : > { %p654_p5 = pnand %p716_p3, %p527_p4 }
   0xb   : > { %p563_p7 = pneg %p654_p5 }
   0xd   : > { %p564_p8 = pnand %p563_p7, %p562_p6 }
   0xf   : > { %p565_p9 = pneg %p564_p8 }
  0x11   : > { %p570_p11 = pnand %p568_p10, %p565_p9 }
  0x13   : > { %573 = shalt.err (!%p570_p11)
}
  0x14   : > { %s574_s28 = scalar_lea.vmem %s159_s18, 192  ;;  %p582_p1 = scmp.lt.s32.totalorder %s159_s18, %s159_s18 }
  0x15   : > { %p575_p12 = scmp.ne.s32.totalorder %s159_s18, %s574_s28  ;;  %p583_p4 = scmp.lt.s32.totalorder %s574_s28, %s574_s28 }
  0x17   : > { %p577_p13 = pnand %p575_p12, %p563_p7  ;;  %p584_p3 = por %p583_p4, %p582_p1 }
  0x19   : > { %p578_p0 = pneg %p577_p13 }
  0x1b   : > { %p585_p2 = pnand %p584_p3, %p578_p0 }
  0x1d   : > { %588 = shalt.err (!%p585_p2)
}
  0x1e   : > { %s602_s29 = smov 64   ;;  %s603_s30 = smov 4  }
  0x1f   : > { %530 = dma.hbm_to_vmem [thread:$0]  (!%p654_p5), %s712_s1, 192, %s159_s18, [#allocation3], %s602_s29, %s602_s29, %s603_s30  }
  0x20   : > { %p720_p6 = scmp.ne.s32.totalorder %s718_s19, 0 }
  0x21   : > { %p721_p8 = scmp.eq.s32.totalorder (!%p720_p6), %s641_s16, 0 }
  0x22   : > { %181 = sbr.rel (%p720_p6) target bundleno = 504 (0x1f8), region = 28 }
  0x29   : > { %594 = dma.done.wait (%p721_p8), [#allocation3], 192   ;;  %p722_p7 = pmov %p721_p8 }
  0x2a   : > { %p213_p2 = scmp.lt.s32.totalorder %s641_s16, 1  ;;  %v604_v0 = vmov 2   ;;  %v605_v1 = vmov 0   ;;  %v236_v2 = vld [vmem:[#allocation2] sm:$0xf]  ;;  %v606_v4 = vmov 1   ;;  %v242_v8 = vlaneseq }
  0x2b   : > { %596 = vsyncadd (%p722_p7), [#allocation3], 4294967104  ;;  %552 = vset.pattern.permute.xlu1 %v604_v0  ;;  %550 = vset.pattern.permute.xlu0 %v605_v1  ;;  %s607_s11 = smov 1   ;;  %v608_v5 = vmov 3   ;;  %v279_v6 = vld [vmem:[#allocation2 + $0x4] sm:$0xf] }
  0x2c   : > { %s724_s16 = smov (!%p213_p2, %s641_s16), 1  ;;  %259 = vperm.xlu1 %552, %v236_v2   ;;  %239 = vperm.xlu0 %550, %v236_v2   ;;  %s609_s12 = smov 127   ;;  %v327_v7 = vld [vmem:[#allocation2 + $0x8] sm:$0xf]  ;;  %v243_v9 = vshrl.u32 %v242_v8, 7  ;;  %vm234_vm0 = vcmask 7168  }
  0x2d   : > { %s682_s7 = sshll.u32 %s724_s16, 2  ;;  %vm324_vm1 = vcmask 121856   ;;  %vm369_vm2 = vcmask 125952   ;;  %vm376_vm3 = vcmask 3072  }
  0x2e   : > { %s216_s10 = scalar_lea.vmem %s711_s0, %s682_s7  ;;  %v244_v12 = vsub.s32 0, %v243_v9  ;;  %v264_v13 = vsub.s32 2, %v243_v9  ;;  %v254_v14 = vsub.s32 1, %v243_v9  ;;  %v274_v16 = vsub.s32 3, %v243_v9  ;;  %s220_s16 = scalar_lea.vmem %s713_s2, %s682_s7 }
  0x2f   : > { %v688_v3 = vld [vmem:[%s216_s10] sm:$0xf]  ;;  %s224_s19 = scalar_lea.vmem %s714_s3, %s682_s7  ;;  %s228_s22 = scalar_lea.vmem %s715_s4, %s682_s7 }
  0x30   : > { %551 = vset.pattern.permute.xlu0 %v606_v4  ;;  %231 = vrot.lane.b32.xlu1 %v688_v3, %s607_s11  ;;  %v288_v26 = vrot.slane %v688_v3, %v244_v12  ;;  %v298_v35 = vrot.slane %v688_v3, %v254_v14  ;;  %v308_v38 = vrot.slane %v688_v3, %v264_v13 }
  0x31   : > { %249 = vperm.xlu0 %551, %v236_v2   ;;  %553 = vset.pattern.permute.xlu1 %v608_v5  ;;  %v318_v43 = vrot.slane %v688_v3, %v274_v16 }
  0x34   : > { %269 = vperm.xlu1 %553, %v236_v2  }
  0x35   : > { %554 = vset.pattern.permute.xlu0 %v605_v1 }
  0x36   : > { %282 = vperm.xlu0 %554, %v279_v6  }
  0x38   : > { %555 = vset.pattern.permute.xlu1 %v606_v4 }
  0x39   : > { %292 = vperm.xlu1 %555, %v279_v6  }
  0x3a   : > { %557 = vset.pattern.permute.xlu0 %v608_v5 }
  0x3b   : > { %312 = vperm.xlu0 %557, %v279_v6  }
  0x3d   : > { %556 = vset.pattern.permute.xlu1 %v604_v0 }
  0x3e   : > { %302 = vperm.xlu1 %556, %v279_v6  }
  0x3f   : > { %321 = vrot.lane.b32.xlu0 %v688_v3, %s609_s12 }
  0x42   : > { %558 = vset.pattern.permute.xlu1 %v605_v1 }
  0x43   : > { %360 = vperm.xlu0 %557, %v327_v7   ;;  %330 = vperm.xlu1 %558, %v327_v7  }
  0x47   : > { %559 = vset.pattern.permute.xlu1 %v606_v4 }
  0x48   : > { %340 = vperm.xlu1 %559, %v327_v7  }
  0x4c   : > { %560 = vset.pattern.permute.xlu1 %v604_v0 }
  0x4d   : > { %350 = vperm.xlu1 %560, %v327_v7  }
  0xab   : > { %v260_v10 = vpop.permute.xlu1 %259  ;;  %v240_v11 = vpop.permute.xlu0 %239 }
  0xaf   : > { %v232_v15 = vpop.permute.xlu1 %231 }
  0xb0   : > { %v235_v17 = vsel %vm234_vm0, 0.0, %v232_v15  ;;  %v250_v18 = vpop.permute.xlu0 %249 }
  0xb1   : > { %v245_v19 = vrot.slane %v235_v17, %v244_v12  ;;  %v265_v20 = vrot.slane %v235_v17, %v264_v13  ;;  %v255_v21 = vrot.slane %v235_v17, %v254_v14  ;;  %v275_v24 = vrot.slane %v235_v17, %v274_v16 }
  0xb3   : > { %v246_v22 = vmul.f32 %v245_v19, %v240_v11  ;;  %v256_v23 = vmul.f32 %v255_v21, %v250_v18  ;;  %v270_v25 = vpop.permute.xlu1 %269  ;;  %v266_v28 = vmul.f32 %v265_v20, %v260_v10 }
  0xb4   : > { %v276_v31 = vmul.f32 %v275_v24, %v270_v25 }
  0xb5   : > { %v257_v27 = vadd.f32 %v256_v23, %v246_v22  ;;  %v283_v29 = vpop.permute.xlu0 %282 }
  0xb6   : > { %v289_v32 = vmul.f32 %v288_v26, %v283_v29 }
  0xb7   : > { %v267_v30 = vadd.f32 %v266_v28, %v257_v27 }
  0xb8   : > { %v293_v33 = vpop.permute.xlu1 %292 }
  0xb9   : > { %v277_v34 = vadd.f32 %v276_v31, %v267_v30  ;;  %v299_v39 = vmul.f32 %v298_v35, %v293_v33 }
  0xba   : > { %v313_v36 = vpop.permute.xlu0 %312 }
  0xbb   : > { %v290_v37 = vadd.f32 %v289_v32, %v277_v34  ;;  %v319_v47 = vmul.f32 %v318_v43, %v313_v36 }
  0xbd   : > { %v303_v40 = vpop.permute.xlu1 %302  ;;  %v300_v42 = vadd.f32 %v299_v39, %v290_v37 }
  0xbe   : > { %v322_v41 = vpop.permute.xlu0 %321  ;;  %v309_v44 = vmul.f32 %v308_v38, %v303_v40 }
  0xbf   : > { %v325_v45 = vsel %vm324_vm1, %v322_v41, 0.0 }
  0xc0   : > { %v310_v48 = vadd.f32 %v309_v44, %v300_v42  ;;  %v336_v49 = vrot.slane %v325_v45, %v244_v12  ;;  %v346_v52 = vrot.slane %v325_v45, %v254_v14  ;;  %v366_v55 = vrot.slane %v325_v45, %v274_v16 }
  0xc1   : > { %v356_v57 = vrot.slane %v325_v45, %v264_v13 }
  0xc2   : > { %v331_v46 = vpop.permute.xlu1 %330  ;;  %v320_v50 = vadd.f32 %v319_v47, %v310_v48  ;;  %v361_v58 = vpop.permute.xlu0 %360 }
  0xc3   : > { %v337_v51 = vmul.f32 %v336_v49, %v331_v46  ;;  %v367_v62 = vmul.f32 %v366_v55, %v361_v58 }
  0xc5   : > { %v338_v56 = vadd.f32 %v337_v51, %v320_v50 }
  0xc7   : > { %v341_v53 = vpop.permute.xlu1 %340 }
  0xc8   : > { %v347_v54 = vmul.f32 %v346_v52, %v341_v53 }
  0xca   : > { %v348_v60 = vadd.f32 %v347_v54, %v338_v56 }
  0xcc   : > { %v351_v59 = vpop.permute.xlu1 %350 }
  0xcd   : > { %v357_v61 = vmul.f32 %v356_v57, %v351_v59 }
  0xcf   : > { %v358_v63 = vadd.f32 %v357_v61, %v348_v60 }
  0xd1   : > { %v368_v0 = vadd.f32 %v367_v62, %v358_v63 }
  0xd3   : > { %v371_v1 = vsel %vm369_vm2, %v368_v0, 0.0  ;;  %370 = vst.msk [vmem:[%s220_s16] sm:$0xf] %vm369_vm2, %v368_v0 }
  0xd4   : > { %372 = vadd.xlane.f32.xlu1 %v371_v1 }
 0x161   : > { %v373_v2 = vpop.xlane.xlu1 %372 }
 0x162   : > { %v374_v3 = vmul.f32 0.0625, %v373_v2 }
 0x164   : > { %v375_v4 = vsub.f32 %v368_v0, %v374_v3  ;;  %377 = vst.msk [vmem:[%s224_s19] sm:$0xf] %vm376_vm3, %v374_v3 }
 0x166   : > { %v378_v5 = vmul.f32 %v375_v4, %v375_v4 }
 0x168   : > { %v379_v6 = vsel %vm369_vm2, %v378_v5, 0.0 }
 0x169   : > { %380 = vadd.xlane.f32.xlu0 %v379_v6 }
 0x1f6   : > { %v381_v7 = vpop.xlane.xlu0 %380 }
 0x1f7   : > { %382 = vst.msk [vmem:[%s228_s22] sm:$0xf] %vm376_vm3, %v381_v7 }
 0x1f8 PF: > { %s16_s15 = sadd.s32 1, %s599_s15  }
 0x1f9   : > { %p13_p3 = scmp.ge.s32.totalorder %s16_s15, 4  }
 0x1fb   :  { %15 = sbr.rel (!%p13_p3) target bundleno = 1 (0x1), region = 89 }
 0x202   :  { %430 = vsyncpa [#allocation3], 1 }
 0x203   :  { %432 = vsyncpa [#allocation3 + $0x1], 1 }

// kernel: basic_block_1d.4
= control target key start
LH: loop header
LB: loop body
LE: loop exit
PB: predicated region body
PF: predicated region fallthrough
CT: control target
= control target key end

     0   :  { %s640_s21 = smov 0   ;;  %s688_s0 = inlined_call_operand.vmem [shape: f32[2,4,16], index: 0, kind: input, shape index: {}]   ;;  %s689_s1 = inlined_call_operand.vmem [shape: f32[4,1], index: 1, kind: input, shape index: {}]   ;;  %s690_s2 = inlined_call_operand.vmem [shape: f32[4,1], index: 2, kind: input, shape index: {}]   ;;  %s691_s3 = inlined_call_operand.vmem [shape: f32[3,4,4], index: 3, kind: input, shape index: {}]   ;;  %s692_s4 = inlined_call_operand.vmem [shape: f32[2,4,16], index: 4, kind: output, shape index: {0}]   ;;  %s693_s5 = inlined_call_operand.vmem [shape: f32[2,4,1], index: 5, kind: output, shape index: {1}]   ;;  %s694_s6 = inlined_call_operand.vmem [shape: f32[2,4,1], index: 6, kind: output, shape index: {2}]  }
   0x1 LB: > { %s552_s22 = sadd.s32 4294967295, %s597_s21   ;;  %p556_p0 = scmp.ge.s32.totalorder %s597_s21, 1  ;;  %s597_s21 = sphi %s640_s21, %s17_s21  }
   0x2   : > { %p216_p1 = scmp.lt.s32.totalorder %s597_s21, 3 }
   0x4   : > { %p217_p2 = pnand %p556_p0, %p216_p1 }
   0x5   : > { %v290_v0 = vld [vmem:[%s691_s3] sm:$0xf] (!%p217_p2)  ;;  %v599_v2 = vmov (!%p217_p2), 0   ;;  %v600_v4 = vmov (!%p217_p2), 1   ;;  %v601_v5 = vmov (!%p217_p2), 2   ;;  %v602_v6 = vmov (!%p217_p2), 3  }
   0x6   : > { %220 = sbr.rel (%p217_p2) target bundleno = 589 (0x24d), region = 36  ;;  %v269_v1 = vld [vmem:[%s689_s1] sm:$0xf] (!%p217_p2)  ;;  %580 = vset.pattern.permute.xlu1 (!%p217_p2), %v599_v2  ;;  %579 = vset.pattern.permute.xlu0 (!%p217_p2), %v599_v2  ;;  %v561_v7 = vld [vmem:[%s691_s3 + $0x4] sm:$0xf] (!%p217_p2)  ;;  %p252_p3 = scmp.lt.s32.totalorder (!%p217_p2), %s552_s22, 1  ;;  %v296_v18 = vlaneseq (!%p217_p2) }
   0x7   : > { %293 = vperm.xlu1 (!%p217_p2), %580, %v290_v0   ;;  %272 = vperm.xlu0 (!%p217_p2), %579, %v269_v1   ;;  %v276_v3 = vld [vmem:[%s690_s2] sm:$0xf] (!%p217_p2)  ;;  %s603_s11 = smov (!%p217_p2), 127   ;;  %s604_s12 = smov (!%p217_p2), 1   ;;  %v562_v14 = vld [vmem:[%s691_s3 + $0x8] sm:$0xf] (!%p217_p2) }
   0x8   : > { %v297_v19 = vshrl.u32 (!%p217_p2), %v296_v18, 7  ;;  %vm288_vm0 = vcmask (!%p217_p2), 7168   ;;  %vm378_vm1 = vcmask (!%p217_p2), 121856   ;;  %vm423_vm2 = vcmask (!%p217_p2), 125952  }
   0x9   : > { %vm430_vm3 = vcmask (!%p217_p2), 3072  }
   0xa   : > { %v298_v21 = vsub.s32 (!%p217_p2), 0, %v297_v19  ;;  %v308_v22 = vsub.s32 (!%p217_p2), 1, %v297_v19  ;;  %v318_v24 = vsub.s32 (!%p217_p2), 2, %v297_v19  ;;  %v328_v32 = vsub.s32 (!%p217_p2), 3, %v297_v19 }
   0xb   : > { %581 = vset.pattern.permute.xlu1 (!%p217_p2), %v600_v4  ;;  %279 = vperm.xlu0 (!%p217_p2), %579, %v276_v3  }
   0xc   : > { %303 = vperm.xlu1 (!%p217_p2), %581, %v290_v0  }
   0xd   : > { %s696_s22 = smov (!%p252_p3, %s552_s22), 1 }
   0xe   : > { %s664_s7 = sshll.u32 %s696_s22, 2 }
   0xf   : > { %582 = vset.pattern.permute.xlu0 %v601_v5  ;;  %s255_s10 = scalar_lea.vmem %s688_s0, %s664_s7  ;;  %s259_s17 = scalar_lea.vmem %s692_s4, %s664_s7 }
  0x10   : > { %583 = vset.pattern.permute.xlu1 %v602_v6  ;;  %313 = vperm.xlu0 %582, %v290_v0   ;;  %v268_v9 = vld [vmem:[%s255_s10] sm:$0xf]  ;;  %s263_s20 = scalar_lea.vmem %s693_s5, %s664_s7  ;;  %s267_s24 = scalar_lea.vmem %s694_s6, %s664_s7 }
  0x11   : > { %323 = vperm.xlu1 %583, %v290_v0  }
  0x14   : > { %584 = vset.pattern.permute.xlu0 %v599_v2 }
  0x15   : > { %585 = vset.pattern.permute.xlu1 %v600_v4  ;;  %336 = vperm.xlu0 %584, %v561_v7  }
  0x16   : > { %346 = vperm.xlu1 %585, %v561_v7  }
  0x19   : > { %587 = vset.pattern.permute.xlu0 %v602_v6 }
  0x1a   : > { %366 = vperm.xlu0 %587, %v561_v7   ;;  %586 = vset.pattern.permute.xlu1 %v601_v5 }
  0x86   : > { %v273_v8 = vpop.permute.xlu0 %272  ;;  %v294_v15 = vpop.permute.xlu1 %293 }
  0x87   : > { %v275_v10 = vmul.f32 %v273_v8, %v268_v9 }
  0x8a   : > { %v280_v11 = vpop.permute.xlu0 %279 }
  0x8b   : > { %v282_v12 = vadd.f32 %v280_v11, %v275_v10  ;;  %v304_v16 = vpop.permute.xlu1 %303 }
  0x8d   : > { %v283_v13 = vmax.f32 %v282_v12, 0.0 }
  0x8f   : > { %375 = vrot.lane.b32.xlu0 %v283_v13, %s603_s11  ;;  %285 = vrot.lane.b32.xlu1 %v283_v13, %s604_s12  ;;  %v314_v28 = vpop.permute.xlu0 %313  ;;  %v342_v39 = vrot.slane %v283_v13, %v298_v21  ;;  %v352_v43 = vrot.slane %v283_v13, %v308_v22  ;;  %v362_v46 = vrot.slane %v283_v13, %v318_v24 }
  0x90   : > { %v324_v17 = vpop.permute.xlu1 %323  ;;  %v372_v53 = vrot.slane %v283_v13, %v328_v32 }
  0x93   : > { %414 = vperm.xlu0 %587, %v562_v14   ;;  %356 = vperm.xlu1 %586, %v561_v7  }
  0x94   : > { %v337_v36 = vpop.permute.xlu0 %336 }
  0x95   : > { %v347_v20 = vpop.permute.xlu1 %346  ;;  %v343_v41 = vmul.f32 %v342_v39, %v337_v36 }
  0x96   : > { %v353_v47 = vmul.f32 %v352_v43, %v347_v20 }
  0x97   : > { %588 = vset.pattern.permute.xlu1 %v599_v2 }
  0x98   : > { %384 = vperm.xlu1 %588, %v562_v14  }
  0x99   : > { %v367_v42 = vpop.permute.xlu0 %366 }
  0x9a   : > { %v373_v55 = vmul.f32 %v372_v53, %v367_v42 }
  0x9c   : > { %589 = vset.pattern.permute.xlu1 %v600_v4 }
  0x9d   : > { %394 = vperm.xlu1 %589, %v562_v14  }
  0xa1   : > { %590 = vset.pattern.permute.xlu1 %v601_v5 }
  0xa2   : > { %404 = vperm.xlu1 %590, %v562_v14  }
 0x101   : > { %v286_v23 = vpop.permute.xlu1 %285  ;;  %v376_v48 = vpop.permute.xlu0 %375 }
 0x102   : > { %v289_v25 = vsel %vm288_vm0, 0.0, %v286_v23  ;;  %v379_v51 = vsel %vm378_vm1, %v376_v48, 0.0 }
 0x103   : > { %v299_v26 = vrot.slane %v289_v25, %v298_v21  ;;  %v309_v27 = vrot.slane %v289_v25, %v308_v22  ;;  %v319_v29 = vrot.slane %v289_v25, %v318_v24  ;;  %v329_v35 = vrot.slane %v289_v25, %v328_v32 }
 0x104   : > { %v390_v56 = vrot.slane %v379_v51, %v298_v21  ;;  %v400_v59 = vrot.slane %v379_v51, %v308_v22  ;;  %v410_v63 = vrot.slane %v379_v51, %v318_v24  ;;  %v420_v2 = vrot.slane %v379_v51, %v328_v32 }
 0x105   : > { %v300_v30 = vmul.f32 %v299_v26, %v294_v15  ;;  %v310_v31 = vmul.f32 %v309_v27, %v304_v16  ;;  %v320_v34 = vmul.f32 %v319_v29, %v314_v28  ;;  %v330_v38 = vmul.f32 %v329_v35, %v324_v17 }
 0x107   : > { %v311_v33 = vadd.f32 %v310_v31, %v300_v30 }
 0x109   : > { %v321_v37 = vadd.f32 %v320_v34, %v311_v33 }
 0x10b   : > { %v331_v40 = vadd.f32 %v330_v38, %v321_v37 }
 0x10d   : > { %v344_v45 = vadd.f32 %v343_v41, %v331_v40 }
 0x10f   : > { %v354_v50 = vadd.f32 %v353_v47, %v344_v45 }
 0x112   : > { %v357_v44 = vpop.permute.xlu1 %356  ;;  %v415_v0 = vpop.permute.xlu0 %414 }
 0x113   : > { %v363_v49 = vmul.f32 %v362_v46, %v357_v44  ;;  %v421_v5 = vmul.f32 %v420_v2, %v415_v0 }
 0x115   : > { %v364_v54 = vadd.f32 %v363_v49, %v354_v50 }
 0x117   : > { %v385_v52 = vpop.permute.xlu1 %384  ;;  %v374_v57 = vadd.f32 %v373_v55, %v364_v54 }
 0x118   : > { %v391_v58 = vmul.f32 %v390_v56, %v385_v52 }
 0x11a   : > { %v392_v62 = vadd.f32 %v391_v58, %v374_v57 }
 0x11c   : > { %v395_v60 = vpop.permute.xlu1 %394 }
 0x11d   : > { %v401_v61 = vmul.f32 %v400_v59, %v395_v60 }
 0x11f   : > { %v402_v3 = vadd.f32 %v401_v61, %v392_v62 }
 0x121   : > { %v405_v1 = vpop.permute.xlu1 %404 }
 0x122   : > { %v411_v4 = vmul.f32 %v410_v63, %v405_v1 }
 0x124   : > { %v412_v6 = vadd.f32 %v411_v4, %v402_v3 }
 0x126   : > { %v422_v7 = vadd.f32 %v421_v5, %v412_v6 }
 0x128   : > { %v425_v8 = vsel %vm423_vm2, %v422_v7, 0.0  ;;  %424 = vst.msk [vmem:[%s259_s17] sm:$0xf] %vm423_vm2, %v422_v7 }
 0x129   : > { %426 = vadd.xlane.f32.xlu1 %v425_v8 }
 0x1b6   : > { %v427_v9 = vpop.xlane.xlu1 %426 }
 0x1b7   : > { %v428_v10 = vmul.f32 0.0625, %v427_v9 }
 0x1b9   : > { %v429_v11 = vsub.f32 %v422_v7, %v428_v10  ;;  %431 = vst.msk [vmem:[%s263_s20] sm:$0xf] %vm430_vm3, %v428_v10 }
 0x1bb   : > { %v432_v12 = vmul.f32 %v429_v11, %v429_v11 }
 0x1bd   : > { %v433_v13 = vsel %vm423_vm2, %v432_v12, 0.0 }
 0x1be   : > { %434 = vadd.xlane.f32.xlu0 %v433_v13 }
 0x24b   : > { %v435_v14 = vpop.xlane.xlu0 %434 }
 0x24c   : > { %436 = vst.msk [vmem:[%s267_s24] sm:$0xf] %vm430_vm3, %v435_v14 }
 0x24d PF: > { %s17_s21 = sadd.s32 1, %s597_s21  }
 0x24e   : > { %p14_p4 = scmp.ge.s32.totalorder %s17_s21, 4  }
 0x250   :  { %16 = sbr.rel (!%p14_p4) target bundleno = 1 (0x1), region = 92 }

</bundles_post_ra>
